<compile_context>
chip_gen: v6e
topology: v6e:2x2x1
jax: 0.10.0
libtpu: 0.0.40
codegen_flags: <defaults>
</compile_context>

<pallas_src>
import functools

import jax
import jax.numpy as jnp
import numpy as np
from jax.experimental import pallas as pl
from jax.experimental.pallas import tpu as pltpu

EPS = 1e-5                      # torch.nn.LayerNorm default
LANE = 128                      # TPU lane width
MATMUL_DTYPE = jnp.bfloat16     # MXU input dtype (f32 accumulation)
VMEM_LIMIT = 32 * 1024 * 1024   # explicit scoped-VMEM limit (safe on v5e..v7x)


def _round_up(n, m):
    return ((n + m - 1) // m) * m


def _pick_time_chunk(T, max_chunk=32):
    """Largest divisor of T that is <= max_chunk (timesteps per grid step)."""
    ts = min(T, max_chunk)
    while T % ts:
        ts -= 1
    return ts


def _layer_norm_padded(v, gamma, beta, n_valid):
    """LayerNorm over the last axis of a lane-padded f32 tile.

    Padded columns of `v`, `gamma`, `beta` are exactly zero, so sums over the
    padded tile equal sums over the valid columns; divide by the true width.
    Single-pass variance (clamped >= 0) saves a full-tile VPU pass.
    """
    inv_n = jnp.float32(1.0 / n_valid)
    s1 = jnp.sum(v, axis=-1, keepdims=True)
    s2 = jnp.sum(v * v, axis=-1, keepdims=True)
    mu = s1 * inv_n
    var = jnp.maximum(s2 * inv_n - mu * mu, 0.0)
    inv_sigma = jax.lax.rsqrt(var + EPS)
    return (v - mu) * inv_sigma * gamma + beta


# -----------------------------------------------------------------------------
# Kernel 1: batched input projection for all timesteps (hoisted off the
# recurrence).  gx = LN2(x @ W_i) + bias   (bias folded into beta2).
# -----------------------------------------------------------------------------
def _input_proj_kernel(x_ref, wi_ref, g2_ref, b2_ref, gx_ref, *, hidden_dim):
    gx = jnp.dot(x_ref[...].astype(MATMUL_DTYPE), wi_ref[...],
                 preferred_element_type=jnp.float32)
    gx_ref[...] = _layer_norm_padded(gx, g2_ref[...], b2_ref[...],
                                     4 * hidden_dim)


# -----------------------------------------------------------------------------
# Kernel 2: serial recurrence.  Each grid step runs TS timesteps; weights and
# LN params are VMEM-resident (constant index maps); h/c carried in VMEM.
# -----------------------------------------------------------------------------
def _lstm_recurrent_kernel(gx_ref, h0_ref, c0_ref, wh_ref,
                           g1_ref, b1_ref, g3_ref, b3_ref,
                           h_seq_ref, c_out_ref,
                           h_carry, c_carry,
                           *, hidden_dim, hidden_pad, steps_per_block,
                           matmul_dtype):
    s = pl.program_id(0)

    @pl.when(s == 0)
    def _init():
        h_carry[...] = h0_ref[...]
        c_carry[...] = c0_ref[...]

    B = h_carry.shape[0]
    Hp = hidden_pad

    # Load weights once; hoist gamma/beta broadcasts above the time loop.
    wh = wh_ref[...]
    g1 = pl.broadcast_to(g1_ref[...], (B, 4 * Hp))
    b1 = pl.broadcast_to(b1_ref[...], (B, 4 * Hp))
    g3 = pl.broadcast_to(g3_ref[...], (B, Hp))
    b3 = pl.broadcast_to(b3_ref[...], (B, Hp))

    def step(t, carry):
        h_prev, c_prev = carry
        # MXU: bf16 inputs, f32 accumulation.
        gh = jnp.dot(h_prev.astype(matmul_dtype), wh,
                     preferred_element_type=jnp.float32)
        # gx_ref[t] already contains LN2(x@W_i) + bias (precomputed).
        gates = _layer_norm_padded(gh, g1, b1, 4 * hidden_dim) + gx_ref[t]

        i_g = gates[:, 0 * Hp:1 * Hp]
        f_g = gates[:, 1 * Hp:2 * Hp]
        g_g = gates[:, 2 * Hp:3 * Hp]
        o_g = gates[:, 3 * Hp:4 * Hp]

        c_new = (jax.nn.sigmoid(f_g) * c_prev
                 + jax.nn.sigmoid(i_g) * jnp.tanh(g_g))
        c_new = _layer_norm_padded(c_new, g3, b3, hidden_dim)
        h_new = jax.nn.sigmoid(o_g) * jnp.tanh(c_new)

        h_seq_ref[t] = h_new.astype(h_seq_ref.dtype)
        return (h_new, c_new)

    h_fin, c_fin = jax.lax.fori_loop(
        0, steps_per_block, step, (h_carry[...], c_carry[...]), unroll=True)

    h_carry[...] = h_fin
    c_carry[...] = c_fin

    # Final cell state: write only once (constant-index out block is
    # VMEM-resident; intermediate writes would be redundant stores).
    @pl.when(s == pl.num_programs(0) - 1)
    def _finalize():
        c_out_ref[...] = c_fin.astype(c_out_ref.dtype)


# -----------------------------------------------------------------------------
# Padding helpers (each gate's column block zero-padded to Hp lanes).
# -----------------------------------------------------------------------------
def _pad_gate_cols(w, H, Hp):
    rows = w.shape[0]
    w4 = w.reshape(rows, 4, H)
    out = jnp.zeros((rows, 4, Hp), w.dtype).at[:, :, :H].set(w4)
    return out.reshape(rows, 4 * Hp)


def _pad_gate_vec(v, H, Hp):
    v4 = v.reshape(4, H)
    out = jnp.zeros((4, Hp), v.dtype).at[:, :H].set(v4)
    return out.reshape(1, 4 * Hp)


def _pad_vec(v, H, Hp):
    return jnp.zeros((1, Hp), v.dtype).at[0, :H].set(v)


def _pad_state(s, H, Hp):
    return jnp.zeros((s.shape[0], Hp), jnp.float32).at[:, :H].set(s)


# -----------------------------------------------------------------------------
# Wrappers
# -----------------------------------------------------------------------------
def _input_projection(x_flat, wi_p, g2_p, b2_p, H, Hp):
    """gx = LN2(x @ W_i) + bias for all (T*B) rows, tiled over rows."""
    TB, D = x_flat.shape
    TM = min(_round_up(TB, 8), 512)
    TB_pad = _round_up(TB, TM)
    if TB_pad != TB:
        x_flat = jnp.zeros((TB_pad, D), x_flat.dtype).at[:TB].set(x_flat)

    gx = pl.pallas_call(
        functools.partial(_input_proj_kernel, hidden_dim=H),
        out_shape=jax.ShapeDtypeStruct((TB_pad, 4 * Hp), jnp.float32),
        grid_spec=pltpu.PrefetchScalarGridSpec(
            num_scalar_prefetch=0,
            grid=(TB_pad // TM,),
            in_specs=[
                pl.BlockSpec((TM, D), lambda r: (r, 0)),
                pl.BlockSpec(wi_p.shape, lambda r: (0, 0)),
                pl.BlockSpec(g2_p.shape, lambda r: (0, 0)),
                pl.BlockSpec(b2_p.shape, lambda r: (0, 0)),
            ],
            out_specs=pl.BlockSpec((TM, 4 * Hp), lambda r: (r, 0)),
        ),
        compiler_params=pltpu.CompilerParams(
            dimension_semantics=("parallel",),
            vmem_limit_bytes=VMEM_LIMIT,
        ),
    )(x_flat, wi_p, g2_p, b2_p)
    return gx[:TB]


def lstm_sequence(x_seq, h0, c0, params):
    """Run T LSTMCell steps: input projection hoisted + fused recurrence.

    x_seq: (T, B, D);  h0, c0: (B, H)  ->  (h_seq (T, B, H), c_T (B, H))
    """
    T, B, D = x_seq.shape
    H = h0.shape[-1]
    Hp = _round_up(H, LANE)
    W_i, W_h, bias, g1, b1, g2, b2, g3, b3 = params

    wi_p = _pad_gate_cols(W_i, H, Hp).astype(MATMUL_DTYPE)              # (D, 4Hp)
    wh_p = jnp.zeros((Hp, 4 * Hp), MATMUL_DTYPE).at[:H, :].set(
        _pad_gate_cols(W_h, H, Hp).astype(MATMUL_DTYPE))                # (Hp, 4Hp)
    g1_p, b1_p = _pad_gate_vec(g1, H, Hp), _pad_gate_vec(b1, H, Hp)
    g2_p = _pad_gate_vec(g2, H, Hp)
    b2_p = _pad_gate_vec(b2 + bias, H, Hp)      # fold bias into LN2's beta
    g3_p, b3_p = _pad_vec(g3, H, Hp), _pad_vec(b3, H, Hp)
    h0_p = _pad_state(h0, H, Hp)
    c0_p = _pad_state(c0, H, Hp)

    # Phase 1: recurrence-independent projection for ALL timesteps.
    gx_all = _input_projection(x_seq.reshape(T * B, D), wi_p, g2_p, b2_p, H, Hp)
    gx_all = gx_all.reshape(T, B, 4 * Hp)

    # Phase 2: serial recurrence, TS timesteps per grid step.
    TS = _pick_time_chunk(T)
    kernel = functools.partial(_lstm_recurrent_kernel, hidden_dim=H,
                               hidden_pad=Hp, steps_per_block=TS,
                               matmul_dtype=MATMUL_DTYPE)

    # Constant block index across the time axis => fetched once, VMEM-resident.
    const = lambda a: pl.BlockSpec(a.shape, lambda s: (0,) * a.ndim)

    grid_spec = pltpu.PrefetchScalarGridSpec(
        num_scalar_prefetch=0,
        grid=(T // TS,),
        in_specs=[
            pl.BlockSpec((TS, B, 4 * Hp), lambda s: (s, 0, 0)),  # gx streamed
            const(h0_p), const(c0_p),                            # initial state
            const(wh_p),                                         # recurrent weight
            const(g1_p), const(b1_p),                            # LN1 params
            const(g3_p), const(b3_p),                            # LN3 params
        ],
        out_specs=[
            pl.BlockSpec((TS, B, Hp), lambda s: (s, 0, 0)),      # h per step
            pl.BlockSpec((B, Hp), lambda s: (0, 0)),             # final cell state
        ],
        scratch_shapes=[pltpu.VMEM((B, Hp), jnp.float32),        # h carry
                        pltpu.VMEM((B, Hp), jnp.float32)],       # c carry
    )

    h_seq_p, c_p = pl.pallas_call(
        kernel,
        grid_spec=grid_spec,
        out_shape=(jax.ShapeDtypeStruct((T, B, Hp), jnp.float32),
                   jax.ShapeDtypeStruct((B, Hp), jnp.float32)),
        compiler_params=pltpu.CompilerParams(
            dimension_semantics=("arbitrary",),                  # recurrence
            vmem_limit_bytes=VMEM_LIMIT,
        ),
    )(gx_all, h0_p, c0_p, wh_p, g1_p, b1_p, g3_p, b3_p)

    return h_seq_p[:, :, :H], c_p[:, :H]


def lstm_cell(x, h, c, params):
    """Single LSTMCell step (same semantics as the PyTorch module's forward)."""
    h_seq, c_new = lstm_sequence(x[None], h, c, params)
    return h_seq[0], c_new


# -----------------------------------------------------------------------------
# Deterministic parameter init (mirrors the PyTorch __init__)
# -----------------------------------------------------------------------------
def init_params(key, input_dim, hidden_dim):
    keys = jax.random.split(key, 8)

    def xavier_uniform(k, fan_in, fan_out):
        bound = np.sqrt(6.0 / (fan_in + fan_out))
        return jax.random.uniform(k, (fan_in, fan_out), jnp.float32, -bound, bound)

    def orthogonal(k, n):
        a = jax.random.normal(k, (n, n), jnp.float32)
        q, r = jnp.linalg.qr(a)
        return q * jnp.sign(jnp.diag(r))[None, :]

    W_i = jnp.concatenate(
        [xavier_uniform(keys[i], input_dim, hidden_dim) for i in range(4)], axis=1)
    W_h = jnp.concatenate(
        [orthogonal(keys[4 + i], hidden_dim) for i in range(4)], axis=1)
    bias = jnp.zeros((4 * hidden_dim,), jnp.float32)
    bias = bias.at[hidden_dim:2 * hidden_dim].set(1.0)       # forget-gate bias = 1
    g1 = jnp.ones((4 * hidden_dim,), jnp.float32); b1 = jnp.zeros((4 * hidden_dim,), jnp.float32)
    g2 = jnp.ones((4 * hidden_dim,), jnp.float32); b2 = jnp.zeros((4 * hidden_dim,), jnp.float32)
    g3 = jnp.ones((hidden_dim,), jnp.float32);     b3 = jnp.zeros((hidden_dim,), jnp.float32)
    return (W_i, W_h, bias, g1, b1, g2, b2, g3, b3)


# -----------------------------------------------------------------------------
# Pure-JAX reference (same bf16 matmul inputs, f32 epilogue)
# -----------------------------------------------------------------------------
def _layer_norm_ref(v, gamma, beta):
    mu = jnp.mean(v, axis=-1, keepdims=True)
    var = jnp.mean((v - mu) ** 2, axis=-1, keepdims=True)    # biased, like torch
    return (v - mu) * jax.lax.rsqrt(var + EPS) * gamma + beta


def lstm_cell_ref(x, h, c, params):
    W_i, W_h, bias, g1, b1, g2, b2, g3, b3 = params
    gh = jnp.dot(h.astype(MATMUL_DTYPE), W_h.astype(MATMUL_DTYPE),
                 preferred_element_type=jnp.float32)
    gx = jnp.dot(x.astype(MATMUL_DTYPE), W_i.astype(MATMUL_DTYPE),
                 preferred_element_type=jnp.float32)
    gates = _layer_norm_ref(gh, g1, b1) + _layer_norm_ref(gx, g2, b2) + bias
    i_g, f_g, g_g, o_g = jnp.split(gates, 4, axis=1)
    c_new = jax.nn.sigmoid(f_g) * c + jax.nn.sigmoid(i_g) * jnp.tanh(g_g)
    c_new = _layer_norm_ref(c_new, g3, b3)
    h_new = jax.nn.sigmoid(o_g) * jnp.tanh(c_new)
    return h_new, c_new


def lstm_sequence_ref(x_seq, h0, c0, params):
    def step(carry, x):
        h, c = lstm_cell_ref(x, carry[0], carry[1], params)
        return (h, c), h
    (h, c), h_seq = jax.lax.scan(step, (h0, c0), x_seq)
    return h_seq, c


if __name__ == "__main__":
    T, B, D, H = 8, 8, 16, 32   # seq len, batch, input_dim, hidden_dim

    key = jax.random.PRNGKey(0)
    kx, kh, kc, kp = jax.random.split(key, 4)
    x_seq = jax.random.normal(kx, (T, B, D), jnp.float32)
    h0 = jax.random.normal(kh, (B, H), jnp.float32)
    c0 = jax.random.normal(kc, (B, H), jnp.float32)
    params = init_params(kp, D, H)

    # fused multi-step run
    h_seq, c_T = lstm_sequence(x_seq, h0, c0, params)
    jax.block_until_ready((h_seq, c_T))

    h_seq_ref, c_T_ref = lstm_sequence_ref(x_seq, h0, c0, params)
    np.testing.assert_allclose(np.asarray(h_seq), np.asarray(h_seq_ref),
                               rtol=2e-3, atol=2e-3)
    np.testing.assert_allclose(np.asarray(c_T), np.asarray(c_T_ref),
                               rtol=2e-3, atol=2e-3)

    # single-step forward (== the PyTorch module's forward)
    h1, c1 = lstm_cell(x_seq[0], h0, c0, params)
    jax.block_until_ready((h1, c1))
    h1_ref, c1_ref = lstm_cell_ref(x_seq[0], h0, c0, params)
    np.testing.assert_allclose(np.asarray(h1), np.asarray(h1_ref), rtol=2e-3, atol=2e-3)
    np.testing.assert_allclose(np.asarray(c1), np.asarray(c1_ref), rtol=2e-3, atol=2e-3)

    print("KERNEL_OK")
</pallas_src>

<mosaic_0001>
module attributes {stable_mosaic.version = 11 : i64} {
  func.func @_input_proj_kernel(%arg0: i32, %arg1: memref<64x16xf32, #tpu.memory_space<vmem>>, %arg2: memref<16x512xbf16, #tpu.memory_space<vmem>>, %arg3: memref<1x512xf32, #tpu.memory_space<vmem>>, %arg4: memref<1x512xf32, #tpu.memory_space<vmem>>, %arg5: memref<64x512xf32, #tpu.memory_space<vmem>>) attributes {dimension_semantics = [#tpu.dimension_semantics<parallel>], iteration_bounds = array<i64: 1>, scalar_prefetch = 0 : i64, scratch_operands = 0 : i64, tpu.core_type = #tpu.core_type<tc>, window_params = [{transform_indices = @transform_0, window_bounds = array<i64: 64, 16>}, {pipeline_mode = #tpu.pipeline_mode<synchronous>, transform_indices = @transform_1, window_bounds = array<i64: 16, 512>}, {pipeline_mode = #tpu.pipeline_mode<synchronous>, transform_indices = @transform_2, window_bounds = array<i64: 1, 512>}, {pipeline_mode = #tpu.pipeline_mode<synchronous>, transform_indices = @transform_3, window_bounds = array<i64: 1, 512>}, {transform_indices = @transform_4, window_bounds = array<i64: 64, 512>}]} {
    %c0 = arith.constant 0 : index
    %c0_0 = arith.constant 0 : index
    %0 = vector.load %arg1[%c0, %c0_0] : memref<64x16xf32, #tpu.memory_space<vmem>>, vector<64x16xf32>
    %1 = arith.truncf %0 : vector<64x16xf32> to vector<64x16xbf16>
    %c0_1 = arith.constant 0 : index
    %c0_2 = arith.constant 0 : index
    %2 = vector.load %arg2[%c0_1, %c0_2] : memref<16x512xbf16, #tpu.memory_space<vmem>>, vector<16x512xbf16>
    %cst = arith.constant dense<0.000000e+00> : vector<64x512xf32>
    %3 = tpu.matmul %1, %2, %cst {dimension_numbers = #tpu.dot_dimension_numbers<[1], [0], [0], [1], [0, 0, 1, 1], [], []>} : vector<64x16xbf16>, vector<16x512xbf16>, vector<64x512xf32> -> vector<64x512xf32>
    %c0_3 = arith.constant 0 : index
    %c0_4 = arith.constant 0 : index
    %4 = vector.load %arg3[%c0_3, %c0_4] : memref<1x512xf32, #tpu.memory_space<vmem>>, vector<1x512xf32>
    %c0_5 = arith.constant 0 : index
    %c0_6 = arith.constant 0 : index
    %5 = vector.load %arg4[%c0_5, %c0_6] : memref<1x512xf32, #tpu.memory_space<vmem>>, vector<1x512xf32>
    %cst_7 = arith.constant dense<0.000000e+00> : vector<64xf32>
    %6 = vector.multi_reduction <add>, %3, %cst_7 [1] : vector<64x512xf32> to vector<64xf32>
    %7 = vector.shape_cast %6 : vector<64xf32> to vector<64x1xf32>
    %8 = arith.mulf %3, %3 : vector<64x512xf32>
    %cst_8 = arith.constant dense<0.000000e+00> : vector<64xf32>
    %9 = vector.multi_reduction <add>, %8, %cst_8 [1] : vector<64x512xf32> to vector<64xf32>
    %10 = vector.shape_cast %9 : vector<64xf32> to vector<64x1xf32>
    %cst_9 = arith.constant 7.812500e-03 : f32
    %11 = vector.broadcast %cst_9 : f32 to vector<64x1xf32>
    %12 = arith.mulf %7, %11 : vector<64x1xf32>
    %cst_10 = arith.constant 7.812500e-03 : f32
    %13 = vector.broadcast %cst_10 : f32 to vector<64x1xf32>
    %14 = arith.mulf %10, %13 : vector<64x1xf32>
    %15 = arith.mulf %12, %12 : vector<64x1xf32>
    %16 = arith.subf %14, %15 : vector<64x1xf32>
    %cst_11 = arith.constant 0.000000e+00 : f32
    %17 = vector.broadcast %cst_11 : f32 to vector<64x1xf32>
    %18 = arith.maximumf %16, %17 : vector<64x1xf32>
    %cst_12 = arith.constant 9.99999974E-6 : f32
    %19 = vector.broadcast %cst_12 : f32 to vector<64x1xf32>
    %20 = arith.addf %18, %19 : vector<64x1xf32>
    %21 = math.rsqrt %20 : vector<64x1xf32>
    %22 = vector.broadcast %12 : vector<64x1xf32> to vector<64x512xf32>
    %23 = arith.subf %3, %22 : vector<64x512xf32>
    %24 = vector.broadcast %21 : vector<64x1xf32> to vector<64x512xf32>
    %25 = arith.mulf %23, %24 : vector<64x512xf32>
    %26 = vector.broadcast %4 : vector<1x512xf32> to vector<64x512xf32>
    %27 = arith.mulf %25, %26 : vector<64x512xf32>
    %28 = vector.broadcast %5 : vector<1x512xf32> to vector<64x512xf32>
    %29 = arith.addf %27, %28 : vector<64x512xf32>
    %c0_13 = arith.constant 0 : index
    %c0_14 = arith.constant 0 : index
    %30 = vector.load %arg5[%c0_13, %c0_14] : memref<64x512xf32, #tpu.memory_space<vmem>>, vector<64x512xf32>
    tpu.vector_store %arg5[%c0_13, %c0_14], %29 {strides = array<i32>} : memref<64x512xf32, #tpu.memory_space<vmem>>, vector<64x512xf32>,
    return
  }
  func.func @transform_0(%arg0: i32) -> (i32, i32) {
    %c0_i32 = arith.constant 0 : i32
    %c0_i32_0 = arith.constant 0 : i32
    return %arg0, %c0_i32 : i32, i32
  }
  func.func @transform_1(%arg0: i32) -> (i32, i32) {
    %c0_i32 = arith.constant 0 : i32
    %c0_i32_0 = arith.constant 0 : i32
    %c0_i32_1 = arith.constant 0 : i32
    return %c0_i32, %c0_i32_0 : i32, i32
  }
  func.func @transform_2(%arg0: i32) -> (i32, i32) {
    %c0_i32 = arith.constant 0 : i32
    %c0_i32_0 = arith.constant 0 : i32
    %c0_i32_1 = arith.constant 0 : i32
    return %c0_i32, %c0_i32_0 : i32, i32
  }
  func.func @transform_3(%arg0: i32) -> (i32, i32) {
    %c0_i32 = arith.constant 0 : i32
    %c0_i32_0 = arith.constant 0 : i32
    %c0_i32_1 = arith.constant 0 : i32
    return %c0_i32, %c0_i32_0 : i32, i32
  }
  func.func @transform_4(%arg0: i32) -> (i32, i32) {
    %c0_i32 = arith.constant 0 : i32
    %c0_i32_0 = arith.constant 0 : i32
    return %arg0, %c0_i32 : i32, i32
  }
}

</mosaic_0001>

<bundles_post_ra>
// kernel: tpu_custom_call.1
= control target key start
LH: loop header
LB: loop body
LE: loop exit
PB: predicated region body
PF: predicated region fallthrough
CT: control target
= control target key end

     0   :  { %v662_v2 = vmov 0   ;;  %vm55_vm0 = vcmask 130048   ;;  %s1086_s0 = inlined_call_operand.vmem [shape: f32[64,16], index: 0, kind: input, shape index: {}]   ;;  %s1087_s1 = inlined_call_operand.vmem [shape: bf16[16,512], index: 1, kind: input, shape index: {}]   ;;  %s1088_s2 = inlined_call_operand.vmem [shape: f32[1,512], index: 2, kind: input, shape index: {}]   ;;  %s1089_s3 = inlined_call_operand.vmem [shape: f32[1,512], index: 3, kind: input, shape index: {}]   ;;  %s1090_s4 = inlined_call_operand.hbm [shape: f32[64,512], index: 4, kind: output, shape index: {}]  }
   0x1   :  { %v618_v0 = vld [vmem:[%s1087_s1 + $0x4] ss:$16 sps:$4 sm:$0xff]   ;;  %v620_v1 = vld [vmem:[%s1087_s1 + $0xc] ss:$16 sps:$4 sm:$0xff]   ;;  %100 = vmatprep.mubr.bf16.mxu0 %v662_v2  ;;  %173 = vmatprep.mubr.bf16.mxu1 %v662_v2  ;;  %v622_v3 = vld [vmem:[%s1087_s1] ss:$16 sps:$4 sm:$0xff]  }
   0x2   :  { %82 = vmatprep.subr.bf16.mxu0 %v618_v0  ;;  %v623_v4 = vld [vmem:[%s1087_s1 + $0x8] ss:$16 sps:$4 sm:$0xff]   ;;  %v19_v5 = vld [vmem:[%s1086_s0] sm:$0xff]  ;;  %155 = vmatprep.subr.bf16.mxu1 %v620_v1 }
   0x3   :  { %v20_v6 = vld [vmem:[%s1086_s0 + $0x8] sm:$0xff]  ;;  %83 = vmatpush1.bf16.msra.mxu0 %v622_v3  ;;  %156 = vmatpush1.bf16.msra.mxu1 %v623_v4 }
   0x4   :  { %v27_v7 = vpack.c.bf16 %v20_v6, %v19_v5 }
   0x5   :  { %9 = vsyncpa [#allocation3], 0  ;;  %v21_v8 = vld [vmem:[%s1086_s0 + $0x10] sm:$0xff]  ;;  %v22_v9 = vld [vmem:[%s1086_s0 + $0x18] sm:$0xff] }
   0x6   :  { %606 = vmatmul.mubr.msk.bf16.vlgmr.msra.gmra.mxu0 %vm55_vm0, %v27_v7  ;;  %610 = vmatmul.mubr.msk.bf16.vlgmr.msra.gmra.mxu1 %vm55_vm0, %v27_v7  ;;  %v28_v10 = vpack.c.bf16 %v22_v9, %v21_v8  ;;  %v23_v11 = vld [vmem:[%s1086_s0 + $0x20] sm:$0xff]  ;;  %v24_v12 = vld [vmem:[%s1086_s0 + $0x28] sm:$0xff]  ;;  %v25_v14 = vld [vmem:[%s1086_s0 + $0x30] sm:$0xff] }
   0x7   :  { %110 = vmatprep.mubr.bf16.mxu0 %v662_v2  ;;  %183 = vmatprep.mubr.bf16.mxu1 %v662_v2  ;;  %v29_v13 = vpack.c.bf16 %v24_v12, %v23_v11  ;;  %v26_v15 = vld [vmem:[%s1086_s0 + $0x38] sm:$0xff] }
   0x8   :  { %v30_v16 = vpack.c.bf16 %v26_v15, %v25_v14 }
   0xe   :  { %607 = vmatmul.mubr.msk.bf16.gmra.mxu0 %vm55_vm0, %v28_v10  ;;  %611 = vmatmul.mubr.msk.bf16.gmra.mxu1 %vm55_vm0, %v28_v10 }
   0xf   :  { %120 = vmatprep.mubr.bf16.mxu0 %v662_v2  ;;  %193 = vmatprep.mubr.bf16.mxu1 %v662_v2 }
  0x16   :  { %608 = vmatmul.mubr.msk.bf16.gmra.mxu0 %vm55_vm0, %v29_v13  ;;  %612 = vmatmul.mubr.msk.bf16.gmra.mxu1 %vm55_vm0, %v29_v13 }
  0x17   :  { %130 = vmatprep.mubr.bf16.mxu0 %v662_v2  ;;  %203 = vmatprep.mubr.bf16.mxu1 %v662_v2 }
  0x1e   :  { %609 = vmatmul.mubr.msk.bf16.gmra.mxu0 %vm55_vm0, %v30_v16  ;;  %613 = vmatmul.mubr.msk.bf16.gmra.mxu1 %vm55_vm0, %v30_v16 }
  0xc6   :  { %v735_v17 = vpop.f32.mrf.mxu0  ;;  %v737_v18 = vpop.f32.mrf.mxu1 }
  0xc7   :  { %v256_v21 = vmul.f32 %v735_v17, %v735_v17  ;;  %v258_v22 = vmul.f32 %v737_v18, %v737_v18 }
  0xc8   :  { %v739_v19 = vpop.f32.mrf.mxu0  ;;  %v741_v20 = vpop.f32.mrf.mxu1 }
  0xc9   :  { %v216_v23 = vadd.f32 %v739_v19, %v735_v17  ;;  %v257_v24 = vmul.f32 %v739_v19, %v739_v19  ;;  %v259_v38 = vmul.f32 %v741_v20, %v741_v20 }
  0xca   :  { %v751_v25 = vpop.f32.mrf.mxu0  ;;  %v753_v26 = vpop.f32.mrf.mxu1 }
  0xcb   :  { %v217_v27 = vadd.f32 %v216_v23, %v737_v18  ;;  %v288_v28 = vadd.f32 %v257_v24, %v256_v21  ;;  %v260_v29 = vmul.f32 %v751_v25, %v751_v25  ;;  %v262_v39 = vmul.f32 %v753_v26, %v753_v26 }
  0xcc   :  { %v758_v30 = vpop.f32.mrf.mxu0  ;;  %v760_v31 = vpop.f32.mrf.mxu1 }
  0xcd   :  { %v221_v32 = vadd.f32 %v758_v30, %v751_v25  ;;  %v261_v33 = vmul.f32 %v758_v30, %v758_v30  ;;  %v218_v34 = vadd.f32 %v217_v27, %v741_v20  ;;  %v289_v35 = vadd.f32 %v288_v28, %v258_v22 }
  0xce   :  { %v767_v36 = vpop.f32.mrf.mxu0  ;;  %v769_v37 = vpop.f32.mrf.mxu1  ;;  %v263_v45 = vmul.f32 %v760_v31, %v760_v31 }
  0xcf   :  { %219 = vadd.xlane.f32.xlu0 %v218_v34  ;;  %v293_v40 = vadd.f32 %v261_v33, %v260_v29  ;;  %v264_v41 = vmul.f32 %v767_v36, %v767_v36  ;;  %v290_v44 = vadd.f32 %v289_v35, %v259_v38  ;;  %v222_v49 = vadd.f32 %v221_v32, %v753_v26 }
  0xd0   :  { %v777_v42 = vpop.f32.mrf.mxu0  ;;  %v779_v43 = vpop.f32.mrf.mxu1  ;;  %v266_v50 = vmul.f32 %v769_v37, %v769_v37 }
  0xd1   :  { %v226_v46 = vadd.f32 %v777_v42, %v767_v36  ;;  %v265_v47 = vmul.f32 %v777_v42, %v777_v42  ;;  %v294_v48 = vadd.f32 %v293_v40, %v262_v39  ;;  %v267_v57 = vmul.f32 %v779_v43, %v779_v43 }
  0xd2   :  { %v790_v51 = vpop.f32.mrf.mxu0  ;;  %v792_v52 = vpop.f32.mrf.mxu1  ;;  %v223_v62 = vadd.f32 %v222_v49, %v760_v31 }
  0xd3   :  { %291 = vadd.xlane.f32.xlu0 %v290_v44  ;;  %v295_v53 = vadd.f32 %v294_v48, %v263_v45  ;;  %v227_v54 = vadd.f32 %v226_v46, %v769_v37  ;;  %v298_v58 = vadd.f32 %v265_v47, %v264_v41  ;;  %v268_v59 = vmul.f32 %v790_v51, %v790_v51 }
  0xd4   :  { %v795_v55 = vpop.f32.mrf.mxu0  ;;  %v797_v56 = vpop.f32.mrf.mxu1  ;;  %v270_v8 = vmul.f32 %v792_v52, %v792_v52 }
  0xd5   :  { %v231_v60 = vadd.f32 %v795_v55, %v790_v51  ;;  %v269_v61 = vmul.f32 %v795_v55, %v795_v55  ;;  %296 = vadd.xlane.f32.xlu1 %v295_v53  ;;  %v299_v1 = vadd.f32 %v298_v58, %v266_v50  ;;  %v228_v2 = vadd.f32 %v227_v54, %v779_v43 }
  0xd6   :  { %v808_v63 = vpop.f32.mrf.mxu0  ;;  %v810_v0 = vpop.f32.mrf.mxu1  ;;  %v271_v24 = vmul.f32 %v797_v56, %v797_v56 }
  0xd7   :  { %224 = vadd.xlane.f32.xlu0 %v223_v62  ;;  %v232_v3 = vadd.f32 %v231_v60, %v792_v52  ;;  %v303_v4 = vadd.f32 %v269_v61, %v268_v59  ;;  %v272_v5 = vmul.f32 %v808_v63, %v808_v63  ;;  %v300_v11 = vadd.f32 %v299_v1, %v267_v57 }
  0xd8   :  { %v816_v6 = vpop.f32.mrf.mxu0  ;;  %v818_v7 = vpop.f32.mrf.mxu1  ;;  %v274_v12 = vmul.f32 %v810_v0, %v810_v0 }
  0xd9   :  { %v236_v9 = vadd.f32 %v816_v6, %v808_v63  ;;  %v273_v10 = vmul.f32 %v816_v6, %v816_v6  ;;  %229 = vadd.xlane.f32.xlu1 %v228_v2  ;;  %v233_v15 = vadd.f32 %v232_v3, %v797_v56  ;;  %v304_v21 = vadd.f32 %v303_v4, %v270_v8 }
  0xda   :  { %v828_v13 = vpop.f32.mrf.mxu0  ;;  %v830_v14 = vpop.f32.mrf.mxu1  ;;  %v275_v27 = vmul.f32 %v818_v7, %v818_v7 }
  0xdb   :  { %301 = vadd.xlane.f32.xlu0 %v300_v11  ;;  %v237_v16 = vadd.f32 %v236_v9, %v810_v0  ;;  %v308_v28 = vadd.f32 %v273_v10, %v272_v5  ;;  %v276_v29 = vmul.f32 %v828_v13, %v828_v13  ;;  %v305_v40 = vadd.f32 %v304_v21, %v271_v24 }
  0xdc   :  { %v834_v22 = vpop.f32.mrf.mxu0  ;;  %v836_v23 = vpop.f32.mrf.mxu1  ;;  %v278_v47 = vmul.f32 %v830_v14, %v830_v14 }
  0xdd   :  { %v241_v32 = vadd.f32 %v834_v22, %v828_v13  ;;  %v277_v33 = vmul.f32 %v834_v22, %v834_v22  ;;  %234 = vadd.xlane.f32.xlu1 %v233_v15  ;;  %v238_v34 = vadd.f32 %v237_v16, %v818_v7  ;;  %v309_v39 = vadd.f32 %v308_v28, %v274_v12 }
  0xde   :  { %v849_v35 = vpop.f32.mrf.mxu0  ;;  %v851_v38 = vpop.f32.mrf.mxu1  ;;  %v279_v62 = vmul.f32 %v836_v23, %v836_v23 }
  0xdf   :  { %239 = vadd.xlane.f32.xlu0 %v238_v34  ;;  %v242_v41 = vadd.f32 %v241_v32, %v830_v14  ;;  %v313_v44 = vadd.f32 %v277_v33, %v276_v29  ;;  %v280_v45 = vmul.f32 %v849_v35, %v849_v35  ;;  %v310_v50 = vadd.f32 %v309_v39, %v275_v27 }
  0xe0   :  { %v856_v46 = vpop.f32.mrf.mxu0  ;;  %v282_v53 = vmul.f32 %v851_v38, %v851_v38  ;;  %v866_v54 = vpop.f32.mrf.mxu1 }
  0xe1   :  { %v246_v48 = vadd.f32 %v856_v46, %v849_v35  ;;  %v281_v49 = vmul.f32 %v856_v46, %v856_v46  ;;  %306 = vadd.xlane.f32.xlu1 %v305_v40  ;;  %v243_v58 = vadd.f32 %v242_v41, %v836_v23  ;;  %v314_v60 = vadd.f32 %v313_v44, %v278_v47 }
  0xe2   :  { %v868_v57 = vpop.f32.mrf.mxu0  ;;  %v283_v1 = vmul.f32 %v866_v54, %v866_v54  ;;  %v885_v9 = vpop.f32.mrf.mxu1 }
  0xe3   :  { %311 = vadd.xlane.f32.xlu0 %v310_v50  ;;  %v247_v59 = vadd.f32 %v246_v48, %v851_v38  ;;  %v318_v2 = vadd.f32 %v281_v49, %v280_v45  ;;  %v284_v3 = vmul.f32 %v868_v57, %v868_v57  ;;  %v315_v12 = vadd.f32 %v314_v60, %v279_v62 }
  0xe4   :  { %v872_v61 = vpop.f32.mrf.mxu0  ;;  %v286_v16 = vmul.f32 %v885_v9, %v885_v9  ;;  %v890_v24 = vpop.f32.mrf.mxu1  ;;  %v449_v45 = vlaneseq }
  0xe5   :  { %v251_v4 = vadd.f32 %v872_v61, %v868_v57  ;;  %v285_v5 = vmul.f32 %v872_v61, %v872_v61  ;;  %244 = vadd.xlane.f32.xlu1 %v243_v58  ;;  %v248_v8 = vadd.f32 %v247_v59, %v866_v54  ;;  %v319_v10 = vadd.f32 %v318_v2, %v282_v53 }
  0xe6   :  { %v287_v29 = vmul.f32 %v890_v24, %v890_v24  ;;  %v450_v53 = vshrl.u32 %v449_v45, 7 }
  0xe7   :  { %v323_v11 = vadd.f32 %v285_v5, %v284_v3  ;;  %249 = vadd.xlane.f32.xlu0 %v248_v8  ;;  %v252_v15 = vadd.f32 %v251_v4, %v885_v9  ;;  %v320_v21 = vadd.f32 %v319_v10, %v283_v1 }
  0xe8   :  { %v451_v5 = vsub.s32 0, %v450_v53  ;;  %v455_v8 = vsub.s32 1, %v450_v53 }
  0xe9   :  { %316 = vadd.xlane.f32.xlu1 %v315_v12  ;;  %v253_v27 = vadd.f32 %v252_v15, %v890_v24  ;;  %v324_v28 = vadd.f32 %v323_v11, %v286_v16  ;;  %v214_v11 = vld [vmem:[%s1088_s2] sm:$0xf]  ;;  %s663_s2 = smov [#allocation2]  }
  0xeb   :  { %321 = vadd.xlane.f32.xlu0 %v320_v21  ;;  %v325_v32 = vadd.f32 %v324_v28, %v287_v29  ;;  %v459_v21 = vsub.s32 2, %v450_v53  ;;  %v215_v29 = vld [vmem:[%s1089_s3] sm:$0xf]  ;;  %s591_s3 = sshll.u32 %s663_s2, 4  ;;  %s592_s3 = int_to_ptr.vmem [resolvable:$true] %s591_s3 }
  0xec   :  { %s640_s15 = scalar_lea.vmem %s592_s3, 4096  ;;  %p645_p1 = scmp.lt.s32.totalorder %s592_s3, %s592_s3 }
  0xed   :  { %254 = vadd.xlane.f32.xlu1 %v253_v27  ;;  %v463_v27 = vsub.s32 3, %v450_v53  ;;  %p641_p0 = scmp.ne.s32.totalorder %s592_s3, %s640_s15  ;;  %p646_p2 = scmp.lt.s32.totalorder %s640_s15, %s640_s15 }
  0xef   :  { %v925_v53 = vrot.slane %v214_v11, %v463_v27  ;;  %p647_p3 = por %p646_p2, %p645_p1 }
  0xf1   :  { %326 = vadd.xlane.f32.xlu1 %v325_v32  ;;  %p648_p4 = pnand %p647_p3, %p641_p0 }
 0x158   :  { %v220_v33 = vpop.xlane.xlu0 %219 }
 0x159   :  { %v895_v34 = vmul.f32 0.0078125, %v220_v33 }
 0x15b   :  { %v344_v40 = vmul.f32 %v895_v34, %v895_v34 }
 0x15c   :  { %v292_v39 = vpop.xlane.xlu0 %291 }
 0x15d   :  { %v336_v41 = vmul.f32 0.0078125, %v292_v39  ;;  %v915_v39 = vrot.slane %v214_v11, %v451_v5 }
 0x15e   :  { %v297_v44 = vpop.xlane.xlu1 %296 }
 0x15f   :  { %v352_v47 = vsub.f32 %v336_v41, %v344_v40  ;;  %v337_v60 = vmul.f32 0.0078125, %v297_v44  ;;  %v917_v40 = vrot.slane %v214_v11, %v455_v8 }
 0x160   :  { %v225_v48 = vpop.xlane.xlu0 %224 }
 0x161   :  { %v360_v49 = vmax.f32 %v352_v47, 0.0  ;;  %v899_v50 = vmul.f32 0.0078125, %v225_v48 }
 0x162   :  { %v230_v58 = vpop.xlane.xlu1 %229 }
 0x163   :  { %v368_v59 = vadd.f32 1e-05, %v360_v49  ;;  %v345_v62 = vmul.f32 %v899_v50, %v899_v50  ;;  %v903_v1 = vmul.f32 0.0078125, %v230_v58  ;;  %v923_v49 = vrot.slane %v214_v11, %v459_v21 }
 0x164   :  { %v302_v2 = vpop.xlane.xlu0 %301  ;;  %v927_v58 = vrot.slane %v215_v29, %v451_v5  ;;  %v939_v11 = vrot.slane %v215_v29, %v463_v27 }
 0x165   :  { %624 = vrsqrt.f32 %v368_v59  ;;  %v353_v3 = vsub.f32 %v337_v60, %v345_v62  ;;  %v338_v4 = vmul.f32 0.0078125, %v302_v2  ;;  %v346_v15 = vmul.f32 %v903_v1, %v903_v1 }
 0x166   :  { %v235_v10 = vpop.xlane.xlu1 %234  ;;  %v929_v59 = vrot.slane %v215_v29, %v455_v8  ;;  %v386_v8 = vsub.f32 %v737_v18, %v895_v34  ;;  %v392_v18 = vsub.f32 %v767_v36, %v903_v1 }
 0x167   :  { %v361_v12 = vmax.f32 %v353_v3, 0.0  ;;  %v910_v16 = vmul.f32 0.0078125, %v235_v10  ;;  %v354_v33 = vsub.f32 %v338_v4, %v346_v15  ;;  %v384_v10 = vsub.f32 %v735_v17, %v895_v34 }
 0x168   :  { %v240_v28 = vpop.xlane.xlu0 %239  ;;  %v937_v15 = vrot.slane %v215_v29, %v459_v21  ;;  %v388_v17 = vsub.f32 %v751_v25, %v899_v50  ;;  %v390_v21 = vsub.f32 %v753_v26, %v899_v50  ;;  %v391_v29 = vsub.f32 %v760_v31, %v899_v50 }
 0x169   :  { %v369_v32 = vadd.f32 1e-05, %v361_v12  ;;  %v919_v41 = vmul.f32 0.0078125, %v240_v28  ;;  %v362_v45 = vmax.f32 %v354_v33, 0.0  ;;  %v347_v47 = vmul.f32 %v910_v16, %v910_v16 }
 0x16a   :  { %v307_v44 = vpop.xlane.xlu1 %306  ;;  %v385_v12 = vsub.f32 %v739_v19, %v895_v34  ;;  %v387_v33 = vsub.f32 %v741_v20, %v895_v34  ;;  %v389_v19 = vsub.f32 %v758_v30, %v899_v50  ;;  %v393_v20 = vsub.f32 %v777_v42, %v903_v1 }
 0x16b   :  { %626 = vrsqrt.f32 %v369_v32  ;;  %v339_v48 = vmul.f32 0.0078125, %v307_v44  ;;  %v370_v62 = vadd.f32 1e-05, %v362_v45  ;;  %v348_v3 = vmul.f32 %v919_v41, %v919_v41 }
 0x16c   :  { %v312_v60 = vpop.xlane.xlu0 %311  ;;  %v394_v25 = vsub.f32 %v769_v37, %v903_v1  ;;  %v395_v30 = vsub.f32 %v779_v43, %v903_v1  ;;  %v396_v36 = vsub.f32 %v790_v51, %v910_v16 }
 0x16d   :  { %v355_v2 = vsub.f32 %v339_v48, %v347_v47  ;;  %v340_v4 = vmul.f32 0.0078125, %v312_v60  ;;  %628 = vrsqrt.f32 %v370_v62 }
 0x16e   :  { %v245_v5 = vpop.xlane.xlu1 %244 }
 0x16f   :  { %v363_v28 = vmax.f32 %v355_v2, 0.0  ;;  %v356_v32 = vsub.f32 %v340_v4, %v348_v3  ;;  %v961_v26 = vmul.f32 0.0078125, %v245_v5  ;;  %v397_v4 = vsub.f32 %v795_v55, %v910_v16 }
 0x170   :  { %v250_v27 = vpop.xlane.xlu0 %249 }
 0x171   :  { %v371_v44 = vadd.f32 1e-05, %v363_v28  ;;  %v364_v45 = vmax.f32 %v356_v32, 0.0  ;;  %v965_v2 = vmul.f32 0.0078125, %v250_v27 }
 0x172   :  { %v625_v47 = vpop.eup %624  ;;  %v317_v34 = vpop.xlane.xlu1 %316 }
 0x173   :  { %v416_v48 = vmul.f32 %v625_v47, %v384_v10  ;;  %v417_v31 = vmul.f32 %v625_v47, %v385_v12  ;;  %v418_v50 = vmul.f32 %v625_v47, %v386_v8  ;;  %v419_v60 = vmul.f32 %v625_v47, %v387_v33 }
 0x174   :  { %630 = vrsqrt.f32 %v371_v44  ;;  %v372_v62 = vadd.f32 1e-05, %v364_v45  ;;  %v322_v3 = vpop.xlane.xlu0 %321  ;;  %v349_v10 = vmul.f32 %v961_v26, %v961_v26  ;;  %v341_v12 = vmul.f32 0.0078125, %v317_v34 }
 0x175   :  { %v469_v42 = vmul.f32 %v915_v39, %v416_v48  ;;  %v470_v37 = vmul.f32 %v917_v40, %v417_v31  ;;  %v471_v43 = vmul.f32 %v923_v49, %v418_v50  ;;  %v472_v1 = vmul.f32 %v925_v53, %v419_v60 }
 0x176   :  { %632 = vrsqrt.f32 %v372_v62  ;;  %v255_v5 = vpop.xlane.xlu1 %254  ;;  %v398_v44 = vsub.f32 %v792_v52, %v910_v16  ;;  %v357_v45 = vsub.f32 %v341_v12, %v349_v10  ;;  %v350_v47 = vmul.f32 %v965_v2, %v965_v2 }
 0x177   :  { %v522_v8 = vadd.f32 %v927_v58, %v469_v42  ;;  %v523_v28 = vadd.f32 %v929_v59, %v470_v37  ;;  %v524_v32 = vadd.f32 %v937_v15, %v471_v43  ;;  %v525_v33 = vadd.f32 %v939_v11, %v472_v1 }
 0x178   :  { %v627_v27 = vpop.eup %626  ;;  %v342_v48 = vmul.f32 0.0078125, %v322_v3  ;;  %v399_v62 = vsub.f32 %v797_v56, %v910_v16  ;;  %v365_v42 = vmax.f32 %v357_v45, 0.0  ;;  %v985_v43 = vmul.f32 0.0078125, %v255_v5 }
 0x179   :  { %554 = vst [vmem:[#allocation2] sm:$0xff] %v522_v8  ;;  %555 = vst [vmem:[#allocation2 + $0x8] sm:$0xff] %v523_v28  ;;  %v420_v34 = vmul.f32 %v627_v27, %v388_v17  ;;  %v421_v31 = vmul.f32 %v627_v27, %v389_v19  ;;  %v422_v50 = vmul.f32 %v627_v27, %v390_v21 }
 0x17a   :  { %556 = vst [vmem:[#allocation2 + $0x10] sm:$0xff] %v524_v32  ;;  %557 = vst [vmem:[#allocation2 + $0x18] sm:$0xff] %v525_v33  ;;  %v423_v60 = vmul.f32 %v627_v27, %v391_v29  ;;  %v358_v37 = vsub.f32 %v342_v48, %v350_v47  ;;  %v629_v12 = vpop.eup %628  ;;  %v400_v17 = vsub.f32 %v808_v63, %v919_v41  ;;  %v373_v56 = vadd.f32 1e-05, %v365_v42  ;;  %v327_v29 = vpop.xlane.xlu1 %326 }
 0x17b   :  { %v473_v52 = vmul.f32 %v915_v39, %v420_v34  ;;  %v474_v1 = vmul.f32 %v917_v40, %v421_v31  ;;  %v475_v3 = vmul.f32 %v923_v49, %v422_v50  ;;  %v401_v19 = vsub.f32 %v816_v6, %v919_v41 }
 0x17c   :  { %v476_v10 = vmul.f32 %v925_v53, %v423_v60  ;;  %v366_v21 = vmax.f32 %v358_v37, 0.0  ;;  %v424_v33 = vmul.f32 %v629_v12, %v392_v18  ;;  %v425_v27 = vmul.f32 %v629_v12, %v393_v20 }
 0x17d   :  { %v526_v5 = vadd.f32 %v927_v58, %v473_v52  ;;  %v527_v8 = vadd.f32 %v929_v59, %v474_v1  ;;  %v528_v28 = vadd.f32 %v937_v15, %v475_v3  ;;  %v426_v45 = vmul.f32 %v629_v12, %v394_v25 }
 0x17e   :  { %v529_v32 = vadd.f32 %v939_v11, %v476_v10  ;;  %v427_v47 = vmul.f32 %v629_v12, %v395_v30  ;;  %634 = vrsqrt.f32 %v373_v56  ;;  %v374_v63 = vadd.f32 1e-05, %v366_v21 }
 0x17f   :  { %558 = vst [vmem:[#allocation2 + $0x20] sm:$0xff] %v526_v5  ;;  %559 = vst [vmem:[#allocation2 + $0x28] sm:$0xff] %v527_v8  ;;  %v351_v6 = vmul.f32 %v985_v43, %v985_v43  ;;  %v343_v48 = vmul.f32 0.0078125, %v327_v29  ;;  %v477_v34 = vmul.f32 %v915_v39, %v424_v33  ;;  %v478_v31 = vmul.f32 %v917_v40, %v425_v27 }
 0x180   :  { %560 = vst [vmem:[#allocation2 + $0x30] sm:$0xff] %v528_v28  ;;  %561 = vst [vmem:[#allocation2 + $0x38] sm:$0xff] %v529_v32  ;;  %v479_v50 = vmul.f32 %v923_v49, %v426_v45  ;;  %v480_v18 = vmul.f32 %v925_v53, %v427_v47  ;;  %v402_v25 = vsub.f32 %v810_v0, %v919_v41  ;;  %636 = vrsqrt.f32 %v374_v63 }
 0x181   :  { %v631_v20 = vpop.eup %630  ;;  %v403_v30 = vsub.f32 %v818_v7, %v919_v41  ;;  %v359_v60 = vsub.f32 %v343_v48, %v351_v6  ;;  %v530_v42 = vadd.f32 %v927_v58, %v477_v34  ;;  %v531_v37 = vadd.f32 %v929_v59, %v478_v31 }
 0x182   :  { %v532_v52 = vadd.f32 %v937_v15, %v479_v50  ;;  %v533_v1 = vadd.f32 %v939_v11, %v480_v18  ;;  %v428_v10 = vmul.f32 %v631_v20, %v396_v36  ;;  %v429_v0 = vmul.f32 %v631_v20, %v397_v4 }
 0x183   :  { %v633_v3 = vpop.eup %632  ;;  %v430_v7 = vmul.f32 %v631_v20, %v398_v44  ;;  %v431_v41 = vmul.f32 %v631_v20, %v399_v62  ;;  %562 = vst [vmem:[#allocation2 + $0x40] sm:$0xff] %v530_v42  ;;  %563 = vst [vmem:[#allocation2 + $0x48] sm:$0xff] %v531_v37  ;;  %v367_v47 = vmax.f32 %v359_v60, 0.0  ;;  %v404_v63 = vsub.f32 %v828_v13, %v961_v26 }
 0x184   :  { %564 = vst [vmem:[#allocation2 + $0x50] sm:$0xff] %v532_v52  ;;  %565 = vst [vmem:[#allocation2 + $0x58] sm:$0xff] %v533_v1  ;;  %v432_v12 = vmul.f32 %v633_v3, %v400_v17  ;;  %v433_v56 = vmul.f32 %v633_v3, %v401_v19  ;;  %v434_v21 = vmul.f32 %v633_v3, %v402_v25 }
 0x185   :  { %v435_v29 = vmul.f32 %v633_v3, %v403_v30  ;;  %v481_v5 = vmul.f32 %v915_v39, %v428_v10  ;;  %v482_v8 = vmul.f32 %v917_v40, %v429_v0  ;;  %v483_v51 = vmul.f32 %v923_v49, %v430_v7 }
 0x186   :  { %v484_v36 = vmul.f32 %v925_v53, %v431_v41  ;;  %v485_v55 = vmul.f32 %v915_v39, %v432_v12  ;;  %v486_v16 = vmul.f32 %v917_v40, %v433_v56  ;;  %v487_v4 = vmul.f32 %v923_v49, %v434_v21 }
 0x187   :  { %v488_v44 = vmul.f32 %v925_v53, %v435_v29  ;;  %v534_v62 = vadd.f32 %v927_v58, %v481_v5  ;;  %v535_v17 = vadd.f32 %v929_v59, %v482_v8  ;;  %v536_v19 = vadd.f32 %v937_v15, %v483_v51 }
 0x188   :  { %v537_v28 = vadd.f32 %v939_v11, %v484_v36  ;;  %v538_v32 = vadd.f32 %v927_v58, %v485_v55  ;;  %v539_v33 = vadd.f32 %v929_v59, %v486_v16  ;;  %v540_v27 = vadd.f32 %v937_v15, %v487_v4 }
 0x189   :  { %v541_v45 = vadd.f32 %v939_v11, %v488_v44  ;;  %566 = vst [vmem:[#allocation2 + $0x60] sm:$0xff] %v534_v62  ;;  %567 = vst [vmem:[#allocation2 + $0x68] sm:$0xff] %v535_v17  ;;  %v405_v6 = vsub.f32 %v834_v22, %v961_v26  ;;  %v406_v48 = vsub.f32 %v830_v14, %v961_v26  ;;  %v375_v31 = vadd.f32 1e-05, %v367_v47 }
 0x18a   :  { %568 = vst [vmem:[#allocation2 + $0x70] sm:$0xff] %v536_v19  ;;  %569 = vst [vmem:[#allocation2 + $0x78] sm:$0xff] %v537_v28  ;;  %v407_v34 = vsub.f32 %v836_v23, %v961_v26  ;;  %v408_v18 = vsub.f32 %v849_v35, %v965_v2  ;;  %v409_v13 = vsub.f32 %v856_v46, %v965_v2 }
 0x18b   :  { %570 = vst [vmem:[#allocation2 + $0x80] sm:$0xff] %v538_v32  ;;  %571 = vst [vmem:[#allocation2 + $0x88] sm:$0xff] %v539_v33  ;;  %v635_v50 = vpop.eup %634  ;;  %v410_v22 = vsub.f32 %v851_v38, %v965_v2  ;;  %v411_v14 = vsub.f32 %v866_v54, %v965_v2  ;;  %638 = vrsqrt.f32 %v375_v31  ;;  %v412_v8 = vsub.f32 %v868_v57, %v985_v43 }
 0x18c   :  { %572 = vst [vmem:[#allocation2 + $0x90] sm:$0xff] %v540_v27  ;;  %573 = vst [vmem:[#allocation2 + $0x98] sm:$0xff] %v541_v45  ;;  %v436_v20 = vmul.f32 %v635_v50, %v404_v63  ;;  %v437_v25 = vmul.f32 %v635_v50, %v405_v6  ;;  %v438_v30 = vmul.f32 %v635_v50, %v406_v48 }
 0x18d   :  { %v439_v60 = vmul.f32 %v635_v50, %v407_v34  ;;  %v637_v42 = vpop.eup %636  ;;  %v413_v51 = vsub.f32 %v872_v61, %v985_v43  ;;  %v414_v36 = vsub.f32 %v885_v9, %v985_v43  ;;  %v415_v55 = vsub.f32 %v890_v24, %v985_v43 }
 0x18e   :  { %v489_v23 = vmul.f32 %v915_v39, %v436_v20  ;;  %v490_v26 = vmul.f32 %v917_v40, %v437_v25  ;;  %v491_v35 = vmul.f32 %v923_v49, %v438_v30  ;;  %v440_v52 = vmul.f32 %v637_v42, %v408_v18 }
 0x18f   :  { %v492_v37 = vmul.f32 %v925_v53, %v439_v60  ;;  %v441_v1 = vmul.f32 %v637_v42, %v409_v13  ;;  %v442_v3 = vmul.f32 %v637_v42, %v410_v22  ;;  %v443_v10 = vmul.f32 %v637_v42, %v411_v14 }
 0x190   :  { %v542_v46 = vadd.f32 %v927_v58, %v489_v23  ;;  %v543_v38 = vadd.f32 %v929_v59, %v490_v26  ;;  %v544_v0 = vadd.f32 %v937_v15, %v491_v35  ;;  %v493_v2 = vmul.f32 %v915_v39, %v440_v52 }
 0x191   :  { %v545_v54 = vadd.f32 %v939_v11, %v492_v37  ;;  %v494_v7 = vmul.f32 %v917_v40, %v441_v1  ;;  %v495_v41 = vmul.f32 %v923_v49, %v442_v3  ;;  %v496_v12 = vmul.f32 %v925_v53, %v443_v10 }
 0x192   :  { %574 = vst [vmem:[#allocation2 + $0xa0] sm:$0xff] %v542_v46  ;;  %575 = vst [vmem:[#allocation2 + $0xa8] sm:$0xff] %v543_v38  ;;  %v546_v56 = vadd.f32 %v927_v58, %v493_v2 }
 0x193   :  { %576 = vst [vmem:[#allocation2 + $0xb0] sm:$0xff] %v544_v0  ;;  %577 = vst [vmem:[#allocation2 + $0xb8] sm:$0xff] %v545_v54  ;;  %v547_v21 = vadd.f32 %v929_v59, %v494_v7  ;;  %v548_v29 = vadd.f32 %v937_v15, %v495_v41  ;;  %v549_v5 = vadd.f32 %v939_v11, %v496_v12 }
 0x194   :  { %578 = vst [vmem:[#allocation2 + $0xc0] sm:$0xff] %v546_v56 }
 0x195   :  { %579 = vst [vmem:[#allocation2 + $0xc8] sm:$0xff] %v547_v21  ;;  %580 = vst [vmem:[#allocation2 + $0xd0] sm:$0xff] %v548_v29 }
 0x196   :  { %581 = vst [vmem:[#allocation2 + $0xd8] sm:$0xff] %v549_v5 }
 0x198   :  { %v639_v16 = vpop.eup %638 }
 0x199   :  { %v444_v4 = vmul.f32 %v639_v16, %v412_v8  ;;  %v445_v44 = vmul.f32 %v639_v16, %v413_v51  ;;  %v446_v62 = vmul.f32 %v639_v16, %v414_v36  ;;  %v447_v17 = vmul.f32 %v639_v16, %v415_v55 }
 0x19b   :  { %v497_v19 = vmul.f32 %v915_v39, %v444_v4  ;;  %v498_v57 = vmul.f32 %v917_v40, %v445_v44  ;;  %v499_v28 = vmul.f32 %v923_v49, %v446_v62  ;;  %v500_v61 = vmul.f32 %v925_v53, %v447_v17 }
 0x19d   :  { %v550_v9 = vadd.f32 %v927_v58, %v497_v19  ;;  %v551_v24 = vadd.f32 %v929_v59, %v498_v57  ;;  %v552_v43 = vadd.f32 %v937_v15, %v499_v28  ;;  %v553_v32 = vadd.f32 %v939_v11, %v500_v61 }
 0x19f   :  { %582 = vst [vmem:[#allocation2 + $0xe0] sm:$0xff] %v550_v9  ;;  %583 = vst [vmem:[#allocation2 + $0xe8] sm:$0xff] %v551_v24 }
 0x1a0   :  { %584 = vst [vmem:[#allocation2 + $0xf0] sm:$0xff] %v552_v43  ;;  %585 = vst [vmem:[#allocation2 + $0xf8] sm:$0xff] %v553_v32 }
 0x1a1   :  { %651 = shalt.err (!%p648_p4)
}
 0x1a2   :  { %s664_s16 = smov 512   ;;  %s665_s17 = smov 32  }
 0x1a3   :  { %597 = dma.vmem_to_hbm [thread:$0]  %s592_s3, 4096, %s1090_s4, [#allocation3], %s664_s16, %s664_s16, %s665_s17  }
 0x1a4   :  { %660 = dma.done.wait [#allocation3], 4096  }
 0x1a5   :  { %661 = vsyncadd [#allocation3], 4294963200 }
 0x1a6   :  { %601 = vsyncpa [#allocation3], 1 }

</bundles_post_ra>
